<compile_context>
chip_gen: v6e
topology: v6e:2x2x1
jax: 0.10.0
libtpu: 0.0.40
codegen_flags: <defaults>
</compile_context>

<pallas_src>
import itertools
import math

import numpy as np
import jax
import jax.numpy as jnp
from jax.experimental import pallas as pl
from jax.experimental.pallas import tpu as pltpu

NUM_CLASSES = 4
NUM_CLASSES_P1 = NUM_CLASSES + 1
EMPTY_OBJ_COEF = 0.1
CLASS_LAMBDA = 1.0
BBOX_LAMBDA = 1.0
IOU_LAMBDA = 1.0
EPS = 1e-7
LANE = 128
C1PAD = 128          # class lanes padded to one full vreg lane width
TILE_N = 256         # row tile for kernel 1 (sized against v7x's 32 MiB scoped VMEM)
NEG_INF = -1e30

_VMEM_SPEC = pl.BlockSpec(memory_space=pltpu.MemorySpace.VMEM)

try:  # jax depends on scipy, so this is normally available
    from scipy.optimize import linear_sum_assignment as _scipy_lsa
except Exception:  # pragma: no cover
    _scipy_lsa = None


# ----------------------------------------------------------------------------
# Kernel 1: matching cost matrix + per-row LSE (gridded over B*Q rows)
#   logits [tileN, 128] (lane-dense, class pads = -1e30), tid [1, Mpad] (pad -1)
#   pbox [4, tileN, 1] (outer-product column operand), tbox [4, 1, Mpad]
#   -> cost [tileN, Mpad], lse [tileN, 128] (lane-broadcast, unmasked vst)
# ----------------------------------------------------------------------------
def _cost_and_lse_kernel(logits_ref, tid_ref, pbox_ref, tbox_ref,
                         cost_ref, lse_ref):
    logits = logits_ref[...]                                  # [tileN, 128] f32
    row_max = jnp.max(logits, axis=1, keepdims=True)          # XLU lane reduce
    e = jnp.exp(logits - row_max)                              # pad lanes -> 0
    s = jnp.sum(e, axis=1, keepdims=True)
    # per-row LSE reused by the loss kernel; broadcast to 128 lanes => unmasked vst
    lse_ref[...] = jnp.broadcast_to(row_max + jnp.log(s), lse_ref.shape)

    inv_s = pl.reciprocal(s, approx=True)                      # EUP; ranking only
    probs = (e * inv_s).astype(jnp.bfloat16)                   # [tileN, 128]

    # cost_class[n, m] = -softmax(logits)[n, tid[m]] as a single K=128 MXU matmul
    tid = tid_ref[...]                                          # [1, Mpad] int32
    cls_iota = jax.lax.broadcasted_iota(jnp.int32, (C1PAD, tid.shape[1]), 0)
    onehot = jnp.where(cls_iota == tid, 1.0, 0.0).astype(jnp.bfloat16)  # pads -> 0 col
    cost_class = -jnp.dot(probs, onehot, preferred_element_type=jnp.float32)

    # L1 cdist + pairwise IoU (boxes used as-is, reference default box_iou)
    p0, p1, p2, p3 = (pbox_ref[k] for k in range(4))            # each [tileN, 1]
    t0, t1, t2, t3 = (tbox_ref[k] for k in range(4))            # each [1, Mpad]
    cost_bbox = (jnp.abs(p0 - t0) + jnp.abs(p1 - t1) +
                 jnp.abs(p2 - t2) + jnp.abs(p3 - t3))
    iw = jnp.maximum(jnp.minimum(p2, t2) - jnp.maximum(p0, t0), 0.0)
    ih = jnp.maximum(jnp.minimum(p3, t3) - jnp.maximum(p1, t1), 0.0)
    inter = iw * ih
    area_p = (p2 - p0) * (p3 - p1)
    area_t = (t2 - t0) * (t3 - t1)
    iou = inter * pl.reciprocal(area_p + area_t - inter + EPS, approx=True)

    cost_ref[...] = (BBOX_LAMBDA * cost_bbox +
                     CLASS_LAMBDA * cost_class -
                     IOU_LAMBDA * iou)


def pallas_cost_and_lse(logits_pad, tid_pad, pbox_cm, tbox_cm, tile_n):
    n_pad = logits_pad.shape[0]
    m_pad = tid_pad.shape[1]
    grid = (n_pad // tile_n,)
    return pl.pallas_call(
        _cost_and_lse_kernel,
        grid_spec=pltpu.PrefetchScalarGridSpec(
            num_scalar_prefetch=0,
            grid=grid,
            in_specs=[
                pl.BlockSpec((tile_n, C1PAD), lambda i: (i, 0)),
                pl.BlockSpec((1, m_pad), lambda i: (0, 0)),
                pl.BlockSpec((4, tile_n, 1), lambda i: (0, i, 0)),
                pl.BlockSpec((4, 1, m_pad), lambda i: (0, 0, 0)),
            ],
            out_specs=[
                pl.BlockSpec((tile_n, m_pad), lambda i: (i, 0)),
                pl.BlockSpec((tile_n, LANE), lambda i: (i, 0)),
            ],
        ),
        out_shape=(jax.ShapeDtypeStruct((n_pad, m_pad), jnp.float32),
                   jax.ShapeDtypeStruct((n_pad, LANE), jnp.float32)),
        compiler_params=pltpu.CompilerParams(
            dimension_semantics=("parallel",),
            vmem_limit_bytes=32 * 1024 * 1024),
    )(logits_pad, tid_pad, pbox_cm, tbox_cm)


# ----------------------------------------------------------------------------
# Kernel 2 (fused): weighted cross-entropy + L1 + CIoU -> one [1, 128] slab
#   ce_pack  [3, 1, Npad]  rows: (logit_at_target, lse, class_weight; pads w=0)
#   box_pack [11, 1, Mpad] rows: pred cxcywh (0..3), tgt cxcywh (4..7),
#                                atan(w/h) pred/tgt (8,9), valid-mask (10)
# ----------------------------------------------------------------------------
def _make_fused_loss_kernel(num_boxes):
    inv_nb = 1.0 / float(num_boxes)

    def kernel(ce_ref, box_ref, out_ref):
        # --- weighted cross-entropy (LSE comes from kernel 1, logit gathered once
        #     in the wrapper; no full-logits re-DMA) ---
        logit_t, lse, w = ce_ref[0], ce_ref[1], ce_ref[2]        # each [1, Npad]
        num = jnp.sum(w * (lse - logit_t), axis=1, keepdims=True)
        den = jnp.sum(w, axis=1, keepdims=True)
        loss_class = num / den                                   # exact: returned value

        pcx, pcy, pw, ph = box_ref[0], box_ref[1], box_ref[2], box_ref[3]
        tcx, tcy, tw, th = box_ref[4], box_ref[5], box_ref[6], box_ref[7]
        atan_p, atan_t, mask = box_ref[8], box_ref[9], box_ref[10]

        # --- L1 (cxcywh, elementwise over matched boxes) ---
        l1 = (jnp.abs(pcx - tcx) + jnp.abs(pcy - tcy) +
              jnp.abs(pw - tw) + jnp.abs(ph - th))
        loss_bbox = jnp.sum(l1 * mask, axis=1, keepdims=True) * inv_nb

        # --- CIoU (xyxy=False, pairwise=False) ---
        px1, px2 = pcx - pw * 0.5, pcx + pw * 0.5
        py1, py2 = pcy - ph * 0.5, pcy + ph * 0.5
        tx1, tx2 = tcx - tw * 0.5, tcx + tw * 0.5
        ty1, ty2 = tcy - th * 0.5, tcy + th * 0.5
        iw = jnp.maximum(jnp.minimum(px2, tx2) - jnp.maximum(px1, tx1), 0.0)
        ih = jnp.maximum(jnp.minimum(py2, ty2) - jnp.maximum(py1, ty1), 0.0)
        inter = iw * ih
        union = pw * ph + tw * th - inter + EPS
        iou = inter / union
        cw = jnp.maximum(px2, tx2) - jnp.minimum(px1, tx1)
        ch = jnp.maximum(py2, ty2) - jnp.minimum(py1, ty1)
        c2 = cw * cw + ch * ch + EPS
        rho2 = (tcx - pcx) ** 2 + (tcy - pcy) ** 2
        v = (4.0 / (math.pi ** 2)) * (atan_t - atan_p) ** 2
        alpha = v / (v - iou + (1.0 + EPS))
        ciou = iou - (rho2 / c2 + v * alpha)
        loss_ciou = jnp.sum((1.0 - ciou) * mask, axis=1, keepdims=True) * inv_nb

        # single lane-dense output slab
        lane = jax.lax.broadcasted_iota(jnp.int32, out_ref.shape, 1)
        out_ref[...] = ((lane == 0).astype(jnp.float32) * loss_class +
                        (lane == 1).astype(jnp.float32) * loss_bbox +
                        (lane == 2).astype(jnp.float32) * loss_ciou)

    return kernel


def pallas_fused_loss(ce_pack, box_pack, num_boxes):
    return pl.pallas_call(
        _make_fused_loss_kernel(num_boxes),
        in_specs=[_VMEM_SPEC, _VMEM_SPEC],
        out_specs=_VMEM_SPEC,
        out_shape=jax.ShapeDtypeStruct((1, LANE), jnp.float32),
    )(ce_pack, box_pack)


# ----------------------------------------------------------------------------
# Host-side assignment (the reference also runs scipy's solver on CPU).
# ----------------------------------------------------------------------------
def _linear_sum_assignment(cost):
    cost = np.asarray(cost, dtype=np.float64)
    if _scipy_lsa is not None:
        rows, cols = _scipy_lsa(cost)
        return np.asarray(rows), np.asarray(cols)
    # Fallback: exact brute force (toy sizes only).
    q, t = cost.shape
    assert t <= q and q <= 10, "brute-force fallback only supports tiny problems"
    perms = np.array(list(itertools.permutations(range(q), t)), dtype=np.int64)
    cols = np.arange(t, dtype=np.int64)
    sums = cost[perms, cols[None, :]].sum(axis=1)
    rows = perms[int(np.argmin(sums))]
    order = np.argsort(rows)
    return rows[order], cols[order]


# ----------------------------------------------------------------------------
# Full forward pass (mirrors BipartiteMatchingLoss.forward)
# ----------------------------------------------------------------------------
def bipartite_matching_loss(logits, boxes, targets):
    B, Q, C1 = logits.shape
    assert C1 == NUM_CLASSES_P1
    n = B * Q
    logits_flat = logits.reshape(n, C1).astype(jnp.float32)
    boxes_flat = boxes.reshape(n, 4).astype(jnp.float32)

    # Row tiling: 256-row tiles at real sizes, single (sublane-rounded) tile for
    # small problems.  Default Buffered(2) pipelining; bigger tiles > deeper buffers.
    if n >= TILE_N:
        tile_n = TILE_N
        n_pad = TILE_N * pl.cdiv(n, TILE_N)
    else:
        n_pad = 8 * pl.cdiv(n, 8)
        tile_n = n_pad

    # Lane-dense logits [n_pad, 128]: pad class lanes with -1e30 so softmax / LSE
    # over 128 lanes equals softmax / LSE over the real C1 classes.
    logits_pad = jnp.pad(logits_flat, ((0, n_pad - n), (0, 0)))
    logits_pad = jnp.pad(logits_pad, ((0, 0), (0, C1PAD - C1)),
                         constant_values=NEG_INF)

    # Pred boxes stay coord-major [4, n_pad, 1]: they are strictly the *column*
    # operand of the pairwise outer products inside kernel 1.
    pbox_cm = jnp.transpose(jnp.pad(boxes_flat, ((0, n_pad - n), (0, 0))))[:, :, None]

    sizes = [int(lab.shape[0]) for lab, _ in targets]
    m_tot = sum(sizes)
    m_pad = LANE * max(1, pl.cdiv(m_tot, LANE))                 # lane-dense cost output
    tgt_ids = jnp.concatenate([lab.reshape(-1) for lab, _ in targets]).astype(jnp.int32)
    tgt_bbox = jnp.concatenate([b for _, b in targets], axis=0).astype(jnp.float32)
    tid_pad = jnp.pad(tgt_ids[None, :], ((0, 0), (0, m_pad - m_tot)),
                      constant_values=-1)                        # [1, m_pad]
    tbox_cm = jnp.transpose(
        jnp.pad(tgt_bbox, ((0, m_pad - m_tot), (0, 0))))[:, None, :]   # [4, 1, m_pad]

    # --- kernel 1: matching cost matrix (+ per-row LSE reused later) ---
    cost, lse = pallas_cost_and_lse(logits_pad, tid_pad, pbox_cm, tbox_cm, tile_n)

    # --- one batched host round-trip (cost + labels), then assignment on host ---
    # TODO(synk): overlap the host matcher with independent device work.
    cost_host, labels_host = jax.device_get((cost, tuple(lab for lab, _ in targets)))
    cost_np = np.asarray(cost_host)[:n, :m_tot].reshape(B, Q, m_tot)
    offsets = np.cumsum([0] + sizes)
    indices = [_linear_sum_assignment(cost_np[i, :, offsets[i]:offsets[i + 1]])
               for i in range(B)]

    num_boxes = float(max(m_tot, 1))   # DETR-style clamp avoids div-by-zero

    # target classes per query.  NOTE: reference uses the *target* permutation both
    # as query positions and as the label gather order (reproduced verbatim).
    target_classes = np.full((B, Q), NUM_CLASSES, dtype=np.int32)
    for i, (_, tgt_perm) in enumerate(indices):
        tj = np.asarray(tgt_perm)
        target_classes[i, tj] = np.asarray(labels_host[i]).reshape(-1)[tj]
    tc = jnp.asarray(target_classes.reshape(n))

    # CE inputs: gather the target-class logit once in the wrapper (tiny XLA gather)
    # instead of re-DMAing the full logits slab into kernel 2.
    logit_tc = jnp.take_along_axis(logits_flat, tc[:, None], axis=1)[:, 0]
    lse_vec = lse[:n, 0]
    w_vec = jnp.where(tc < NUM_CLASSES, 1.0, EMPTY_OBJ_COEF).astype(jnp.float32)
    nce_pad = LANE * pl.cdiv(n, LANE)
    ce_pack = jnp.stack([
        jnp.pad(logit_tc, (0, nce_pad - n)),
        jnp.pad(lse_vec, (0, nce_pad - n)),
        jnp.pad(w_vec, (0, nce_pad - n)),        # weight 0 => padded rows inert
    ])[:, None, :]                               # [3, 1, nce_pad]

    # matched box gathers (reference also uses the target permutation as query index)
    batch_idx = np.concatenate([np.full(np.asarray(tj).shape, i, dtype=np.int64)
                                for i, (_, tj) in enumerate(indices)])
    query_idx = np.concatenate([np.asarray(tj) for _, tj in indices])
    tgt_gather = np.concatenate([offsets[i] + np.asarray(tj)
                                 for i, (_, tj) in enumerate(indices)])
    flat_idx = (batch_idx * Q + query_idx).astype(np.int32)
    pred_sel = jnp.take(boxes_flat, jnp.asarray(flat_idx), axis=0)                  # [M,4]
    tgt_sel = jnp.take(tgt_bbox, jnp.asarray(tgt_gather.astype(np.int32)), axis=0)  # [M,4]
    # TODO(synk): arctan stays in the wrapper (single fused op, EPS-guarded) —
    # transcendental atan is not guaranteed to lower inside Mosaic.
    atan_p = jnp.arctan(pred_sel[:, 2] / (pred_sel[:, 3] + EPS))
    atan_t = jnp.arctan(tgt_sel[:, 2] / (tgt_sel[:, 3] + EPS))
    mask = jnp.ones((m_tot,), jnp.float32)
    mb_pad = LANE * max(1, pl.cdiv(m_tot, LANE))
    box_rows = jnp.concatenate(
        [jnp.transpose(pred_sel), jnp.transpose(tgt_sel),
         atan_p[None, :], atan_t[None, :], mask[None, :]], axis=0)        # [11, M]
    box_pack = jnp.pad(box_rows, ((0, 0), (0, mb_pad - m_tot)))[:, None, :]  # [11,1,Mpad]

    # --- kernel 2: fused class-CE + L1 + CIoU -> [1, 128] slab ---
    slab = pallas_fused_loss(ce_pack, box_pack, num_boxes)
    return {"loss_bbox": slab[0, 1],
            "loss_class": slab[0, 0],
            "loss_ciou": slab[0, 2]}


if __name__ == "__main__":
    key = jax.random.PRNGKey(0)
    B, Q = 2, 8
    C1 = NUM_CLASSES + 1
    k1, k2, k3, k4 = jax.random.split(key, 4)

    logits = jax.random.normal(k1, (B, Q, C1), jnp.float32)
    boxes = jnp.concatenate(
        [jax.random.uniform(k2, (B, Q, 2), minval=0.2, maxval=0.8),
         jax.random.uniform(k3, (B, Q, 2), minval=0.1, maxval=0.4)], axis=-1)

    n_tgt = [3, 2]
    targets = []
    tkeys = jax.random.split(k4, 2 * B)
    for i in range(B):
        lab = jax.random.randint(tkeys[2 * i], (n_tgt[i], 1), 0, NUM_CLASSES,
                                 dtype=jnp.int32)
        tb = jnp.concatenate(
            [jax.random.uniform(tkeys[2 * i + 1], (n_tgt[i], 2),
                                minval=0.2, maxval=0.8),
             jax.random.uniform(jax.random.fold_in(tkeys[2 * i + 1], 7),
                                (n_tgt[i], 2), minval=0.1, maxval=0.4)],
            axis=-1)
        targets.append((lab, tb))

    losses = bipartite_matching_loss(logits, boxes, targets)
    jax.block_until_ready(losses)
    print("KERNEL_OK")
</pallas_src>

<mosaic_0001>
module attributes {stable_mosaic.version = 11 : i64} {
  func.func @_cost_and_lse_kernel(%arg0: i32, %arg1: memref<16x128xf32, #tpu.memory_space<vmem>>, %arg2: memref<1x128xi32, #tpu.memory_space<vmem>>, %arg3: memref<4x16x1xf32, #tpu.memory_space<vmem>>, %arg4: memref<4x1x128xf32, #tpu.memory_space<vmem>>, %arg5: memref<16x128xf32, #tpu.memory_space<vmem>>, %arg6: memref<16x128xf32, #tpu.memory_space<vmem>>) attributes {dimension_semantics = [#tpu.dimension_semantics<parallel>], iteration_bounds = array<i64: 1>, scalar_prefetch = 0 : i64, scratch_operands = 0 : i64, tpu.core_type = #tpu.core_type<tc>, window_params = [{transform_indices = @transform_0, window_bounds = array<i64: 16, 128>}, {pipeline_mode = #tpu.pipeline_mode<synchronous>, transform_indices = @transform_1, window_bounds = array<i64: 1, 128>}, {transform_indices = @transform_2, window_bounds = array<i64: 4, 16, 1>}, {pipeline_mode = #tpu.pipeline_mode<synchronous>, transform_indices = @transform_3, window_bounds = array<i64: 4, 1, 128>}, {transform_indices = @transform_4, window_bounds = array<i64: 16, 128>}, {transform_indices = @transform_5, window_bounds = array<i64: 16, 128>}]} {
    %c0 = arith.constant 0 : index
    %c0_0 = arith.constant 0 : index
    %0 = vector.load %arg1[%c0, %c0_0] : memref<16x128xf32, #tpu.memory_space<vmem>>, vector<16x128xf32>
    %cst = arith.constant dense<0xFF800000> : vector<16xf32>
    %1 = vector.multi_reduction <maximumf>, %0, %cst [1] : vector<16x128xf32> to vector<16xf32>
    %2 = vector.shape_cast %1 : vector<16xf32> to vector<16x1xf32>
    %3 = vector.broadcast %2 : vector<16x1xf32> to vector<16x128xf32>
    %4 = arith.subf %0, %3 : vector<16x128xf32>
    %5 = math.exp %4 : vector<16x128xf32>
    %cst_1 = arith.constant dense<0.000000e+00> : vector<16xf32>
    %6 = vector.multi_reduction <add>, %5, %cst_1 [1] : vector<16x128xf32> to vector<16xf32>
    %7 = vector.shape_cast %6 : vector<16xf32> to vector<16x1xf32>
    %8 = math.log %7 : vector<16x1xf32>
    %9 = arith.addf %2, %8 : vector<16x1xf32>
    %10 = vector.shape_cast %9 : vector<16x1xf32> to vector<16x1xf32>
    %11 = vector.broadcast %10 : vector<16x1xf32> to vector<16x128xf32>
    %c0_2 = arith.constant 0 : index
    %c0_3 = arith.constant 0 : index
    %12 = vector.load %arg6[%c0_2, %c0_3] : memref<16x128xf32, #tpu.memory_space<vmem>>, vector<16x128xf32>
    tpu.vector_store %arg6[%c0_2, %c0_3], %11 {strides = array<i32>} : memref<16x128xf32, #tpu.memory_space<vmem>>, vector<16x128xf32>,
    %13 = tpu.reciprocal %7 {approx = true} : vector<16x1xf32> -> vector<16x1xf32>
    %14 = vector.broadcast %13 : vector<16x1xf32> to vector<16x128xf32>
    %15 = arith.mulf %5, %14 : vector<16x128xf32>
    %16 = arith.truncf %15 : vector<16x128xf32> to vector<16x128xbf16>
    %c0_4 = arith.constant 0 : index
    %c0_5 = arith.constant 0 : index
    %17 = vector.load %arg2[%c0_4, %c0_5] : memref<1x128xi32, #tpu.memory_space<vmem>>, vector<1x128xi32>
    %18 = tpu.iota {dimensions = array<i32: 0>} : vector<128x128xi32>
    %19 = vector.broadcast %17 : vector<1x128xi32> to vector<128x128xi32>
    %20 = arith.cmpi eq, %18, %19 : vector<128x128xi32>
    %cst_6 = arith.constant 1.000000e+00 : f32
    %cst_7 = arith.constant 0.000000e+00 : f32
    %21 = vector.broadcast %cst_6 : f32 to vector<128x128xf32>
    %22 = vector.broadcast %cst_7 : f32 to vector<128x128xf32>
    %23 = arith.select %20, %21, %22 : vector<128x128xi1>, vector<128x128xf32>
    %24 = arith.truncf %23 : vector<128x128xf32> to vector<128x128xbf16>
    %cst_8 = arith.constant dense<0.000000e+00> : vector<16x128xf32>
    %25 = tpu.matmul %16, %24, %cst_8 {dimension_numbers = #tpu.dot_dimension_numbers<[1], [0], [0], [1], [0, 0, 1, 1], [], []>} : vector<16x128xbf16>, vector<128x128xbf16>, vector<16x128xf32> -> vector<16x128xf32>
    %cst_9 = arith.constant 0.000000e+00 : f32
    %26 = vector.broadcast %cst_9 : f32 to vector<16x128xf32>
    %27 = arith.subf %26, %25 : vector<16x128xf32>
    %c0_10 = arith.constant 0 : index
    %c0_11 = arith.constant 0 : index
    %c0_12 = arith.constant 0 : index
    %28 = vector.load %arg3[%c0_10, %c0_11, %c0_12] : memref<4x16x1xf32, #tpu.memory_space<vmem>>, vector<1x16x1xf32>
    %29 = vector.shape_cast %28 : vector<1x16x1xf32> to vector<16x1xf32>
    %c1 = arith.constant 1 : index
    %c0_13 = arith.constant 0 : index
    %c0_14 = arith.constant 0 : index
    %30 = vector.load %arg3[%c1, %c0_13, %c0_14] : memref<4x16x1xf32, #tpu.memory_space<vmem>>, vector<1x16x1xf32>
    %31 = vector.shape_cast %30 : vector<1x16x1xf32> to vector<16x1xf32>
    %c2 = arith.constant 2 : index
    %c0_15 = arith.constant 0 : index
    %c0_16 = arith.constant 0 : index
    %32 = vector.load %arg3[%c2, %c0_15, %c0_16] : memref<4x16x1xf32, #tpu.memory_space<vmem>>, vector<1x16x1xf32>
    %33 = vector.shape_cast %32 : vector<1x16x1xf32> to vector<16x1xf32>
    %c3 = arith.constant 3 : index
    %c0_17 = arith.constant 0 : index
    %c0_18 = arith.constant 0 : index
    %34 = vector.load %arg3[%c3, %c0_17, %c0_18] : memref<4x16x1xf32, #tpu.memory_space<vmem>>, vector<1x16x1xf32>
    %35 = vector.shape_cast %34 : vector<1x16x1xf32> to vector<16x1xf32>
    %c0_19 = arith.constant 0 : index
    %c0_20 = arith.constant 0 : index
    %c0_21 = arith.constant 0 : index
    %36 = vector.load %arg4[%c0_19, %c0_20, %c0_21] : memref<4x1x128xf32, #tpu.memory_space<vmem>>, vector<1x1x128xf32>
    %37 = vector.shape_cast %36 : vector<1x1x128xf32> to vector<1x128xf32>
    %c1_22 = arith.constant 1 : index
    %c0_23 = arith.constant 0 : index
    %c0_24 = arith.constant 0 : index
    %38 = vector.load %arg4[%c1_22, %c0_23, %c0_24] : memref<4x1x128xf32, #tpu.memory_space<vmem>>, vector<1x1x128xf32>
    %39 = vector.shape_cast %38 : vector<1x1x128xf32> to vector<1x128xf32>
    %c2_25 = arith.constant 2 : index
    %c0_26 = arith.constant 0 : index
    %c0_27 = arith.constant 0 : index
    %40 = vector.load %arg4[%c2_25, %c0_26, %c0_27] : memref<4x1x128xf32, #tpu.memory_space<vmem>>, vector<1x1x128xf32>
    %41 = vector.shape_cast %40 : vector<1x1x128xf32> to vector<1x128xf32>
    %c3_28 = arith.constant 3 : index
    %c0_29 = arith.constant 0 : index
    %c0_30 = arith.constant 0 : index
    %42 = vector.load %arg4[%c3_28, %c0_29, %c0_30] : memref<4x1x128xf32, #tpu.memory_space<vmem>>, vector<1x1x128xf32>
    %43 = vector.shape_cast %42 : vector<1x1x128xf32> to vector<1x128xf32>
    %44 = vector.broadcast %29 : vector<16x1xf32> to vector<16x128xf32>
    %45 = vector.broadcast %37 : vector<1x128xf32> to vector<16x128xf32>
    %46 = arith.subf %44, %45 : vector<16x128xf32>
    %47 = math.absf %46 : vector<16x128xf32>
    %48 = vector.broadcast %31 : vector<16x1xf32> to vector<16x128xf32>
    %49 = vector.broadcast %39 : vector<1x128xf32> to vector<16x128xf32>
    %50 = arith.subf %48, %49 : vector<16x128xf32>
    %51 = math.absf %50 : vector<16x128xf32>
    %52 = arith.addf %47, %51 : vector<16x128xf32>
    %53 = vector.broadcast %33 : vector<16x1xf32> to vector<16x128xf32>
    %54 = vector.broadcast %41 : vector<1x128xf32> to vector<16x128xf32>
    %55 = arith.subf %53, %54 : vector<16x128xf32>
    %56 = math.absf %55 : vector<16x128xf32>
    %57 = arith.addf %52, %56 : vector<16x128xf32>
    %58 = vector.broadcast %35 : vector<16x1xf32> to vector<16x128xf32>
    %59 = vector.broadcast %43 : vector<1x128xf32> to vector<16x128xf32>
    %60 = arith.subf %58, %59 : vector<16x128xf32>
    %61 = math.absf %60 : vector<16x128xf32>
    %62 = arith.addf %57, %61 : vector<16x128xf32>
    %63 = vector.broadcast %33 : vector<16x1xf32> to vector<16x128xf32>
    %64 = vector.broadcast %41 : vector<1x128xf32> to vector<16x128xf32>
    %65 = arith.minimumf %63, %64 : vector<16x128xf32>
    %66 = vector.broadcast %29 : vector<16x1xf32> to vector<16x128xf32>
    %67 = vector.broadcast %37 : vector<1x128xf32> to vector<16x128xf32>
    %68 = arith.maximumf %66, %67 : vector<16x128xf32>
    %69 = arith.subf %65, %68 : vector<16x128xf32>
    %cst_31 = arith.constant 0.000000e+00 : f32
    %70 = vector.broadcast %cst_31 : f32 to vector<16x128xf32>
    %71 = arith.maximumf %69, %70 : vector<16x128xf32>
    %72 = vector.broadcast %35 : vector<16x1xf32> to vector<16x128xf32>
    %73 = vector.broadcast %43 : vector<1x128xf32> to vector<16x128xf32>
    %74 = arith.minimumf %72, %73 : vector<16x128xf32>
    %75 = vector.broadcast %31 : vector<16x1xf32> to vector<16x128xf32>
    %76 = vector.broadcast %39 : vector<1x128xf32> to vector<16x128xf32>
    %77 = arith.maximumf %75, %76 : vector<16x128xf32>
    %78 = arith.subf %74, %77 : vector<16x128xf32>
    %cst_32 = arith.constant 0.000000e+00 : f32
    %79 = vector.broadcast %cst_32 : f32 to vector<16x128xf32>
    %80 = arith.maximumf %78, %79 : vector<16x128xf32>
    %81 = arith.mulf %71, %80 : vector<16x128xf32>
    %82 = arith.subf %33, %29 : vector<16x1xf32>
    %83 = arith.subf %35, %31 : vector<16x1xf32>
    %84 = arith.mulf %82, %83 : vector<16x1xf32>
    %85 = arith.subf %41, %37 : vector<1x128xf32>
    %86 = arith.subf %43, %39 : vector<1x128xf32>
    %87 = arith.mulf %85, %86 : vector<1x128xf32>
    %88 = vector.broadcast %84 : vector<16x1xf32> to vector<16x128xf32>
    %89 = vector.broadcast %87 : vector<1x128xf32> to vector<16x128xf32>
    %90 = arith.addf %88, %89 : vector<16x128xf32>
    %91 = arith.subf %90, %81 : vector<16x128xf32>
    %cst_33 = arith.constant 1.000000e-07 : f32
    %92 = vector.broadcast %cst_33 : f32 to vector<16x128xf32>
    %93 = arith.addf %91, %92 : vector<16x128xf32>
    %94 = tpu.reciprocal %93 {approx = true} : vector<16x128xf32> -> vector<16x128xf32>
    %95 = arith.mulf %81, %94 : vector<16x128xf32>
    %cst_34 = arith.constant 1.000000e+00 : f32
    %96 = vector.broadcast %cst_34 : f32 to vector<16x128xf32>
    %97 = arith.mulf %96, %62 : vector<16x128xf32>
    %cst_35 = arith.constant 1.000000e+00 : f32
    %98 = vector.broadcast %cst_35 : f32 to vector<16x128xf32>
    %99 = arith.mulf %98, %27 : vector<16x128xf32>
    %100 = arith.addf %97, %99 : vector<16x128xf32>
    %cst_36 = arith.constant 1.000000e+00 : f32
    %101 = vector.broadcast %cst_36 : f32 to vector<16x128xf32>
    %102 = arith.mulf %101, %95 : vector<16x128xf32>
    %103 = arith.subf %100, %102 : vector<16x128xf32>
    %c0_37 = arith.constant 0 : index
    %c0_38 = arith.constant 0 : index
    %104 = vector.load %arg5[%c0_37, %c0_38] : memref<16x128xf32, #tpu.memory_space<vmem>>, vector<16x128xf32>
    tpu.vector_store %arg5[%c0_37, %c0_38], %103 {strides = array<i32>} : memref<16x128xf32, #tpu.memory_space<vmem>>, vector<16x128xf32>,
    return
  }
  func.func @transform_0(%arg0: i32) -> (i32, i32) {
    %c0_i32 = arith.constant 0 : i32
    %c0_i32_0 = arith.constant 0 : i32
    return %arg0, %c0_i32 : i32, i32
  }
  func.func @transform_1(%arg0: i32) -> (i32, i32) {
    %c0_i32 = arith.constant 0 : i32
    %c0_i32_0 = arith.constant 0 : i32
    %c0_i32_1 = arith.constant 0 : i32
    return %c0_i32, %c0_i32_0 : i32, i32
  }
  func.func @transform_2(%arg0: i32) -> (i32, i32, i32) {
    %c0_i32 = arith.constant 0 : i32
    %c0_i32_0 = arith.constant 0 : i32
    %c0_i32_1 = arith.constant 0 : i32
    return %c0_i32, %arg0, %c0_i32_0 : i32, i32, i32
  }
  func.func @transform_3(%arg0: i32) -> (i32, i32, i32) {
    %c0_i32 = arith.constant 0 : i32
    %c0_i32_0 = arith.constant 0 : i32
    %c0_i32_1 = arith.constant 0 : i32
    %c0_i32_2 = arith.constant 0 : i32
    return %c0_i32, %c0_i32_0, %c0_i32_1 : i32, i32, i32
  }
  func.func @transform_4(%arg0: i32) -> (i32, i32) {
    %c0_i32 = arith.constant 0 : i32
    %c0_i32_0 = arith.constant 0 : i32
    return %arg0, %c0_i32 : i32, i32
  }
  func.func @transform_5(%arg0: i32) -> (i32, i32) {
    %c0_i32 = arith.constant 0 : i32
    %c0_i32_0 = arith.constant 0 : i32
    return %arg0, %c0_i32 : i32, i32
  }
}

</mosaic_0001>

<bundles_post_ra>
// kernel: tpu_custom_call.1
= control target key start
LH: loop header
LB: loop body
LE: loop exit
PB: predicated region body
PF: predicated region fallthrough
CT: control target
= control target key end

     0   :  { %11 = vsyncpa [#allocation3], 0  ;;  %s641_s0 = inlined_call_operand.vmem [shape: f32[16,128], index: 0, kind: input, shape index: {}]   ;;  %s642_s1 = inlined_call_operand.vmem [shape: s32[1,128], index: 1, kind: input, shape index: {}]   ;;  %s643_s2 = inlined_call_operand.vmem [shape: f32[4,16,1], index: 2, kind: input, shape index: {}]   ;;  %s644_s3 = inlined_call_operand.vmem [shape: f32[4,1,128], index: 3, kind: input, shape index: {}]   ;;  %s645_s4 = inlined_call_operand.hbm [shape: f32[16,128], index: 4, kind: output, shape index: {0}]   ;;  %s646_s5 = inlined_call_operand.hbm [shape: f32[16,128], index: 5, kind: output, shape index: {1}]  }
   0x1   :  { %v22_v0 = vld [vmem:[%s641_s0] sm:$0xff] }
   0x2   :  { %12 = vsyncpa [#allocation5], 0  ;;  %24 = vmax.xlane.f32.xlu0 %v22_v0  ;;  %v23_v1 = vld [vmem:[%s641_s0 + $0x8] sm:$0xff]  ;;  %v52_v2 = vlaneseq  ;;  %v476_v3 = vmov 0.0   ;;  %v526_v5 = vld [vmem:[%s642_s1] ss:$0 sm:$0xff] }
   0x3   :  { %386 = vmatprep.subr.bf16.mxu0 %v476_v3  ;;  %v477_v12 = vmov 1.0|1.0   ;;  %v478_v25 = vmov 0   ;;  %v157_v26 = vld [vmem:[%s643_s2 + $0x8] sm:$0xff]  ;;  %v368_v29 = vld [vmem:[%s643_s2 + $0x10] sm:$0xff]  ;;  %v369_v32 = vld [vmem:[%s643_s2 + $0x18] sm:$0xff] }
   0x4   :  { %v521_v4 = vshrl.u32 %v52_v2, 7  ;;  %415 = vset.pattern.permute.xlu1 %v478_v25  ;;  %414 = vset.pattern.permute.xlu0 %v478_v25  ;;  %v370_v34 = vld [vmem:[%s643_s2 + $0x20] sm:$0xff]  ;;  %v371_v35 = vld [vmem:[%s643_s2 + $0x28] sm:$0xff]  ;;  %v373_v38 = vld [vmem:[%s643_s2 + $0x38] sm:$0xff] }
   0x5   :  { %v279_v36 = vsub.f32 %v371_v35, %v157_v26  ;;  %v156_v37 = vld [vmem:[%s643_s2] sm:$0xff]  ;;  %v281_v39 = vsub.f32 %v373_v38, %v369_v32  ;;  %v372_v41 = vld [vmem:[%s643_s2 + $0x30] sm:$0xff]  ;;  %s480_s2 = smov [#allocation4]  }
   0x6   :  { %26 = vmax.xlane.f32.xlu0 %v23_v1  ;;  %v67_v6 = vadd.s32 112, %v521_v4  ;;  %v68_v7 = vadd.s32 120, %v521_v4  ;;  %v65_v8 = vadd.s32 96, %v521_v4  ;;  %v66_v9 = vadd.s32 104, %v521_v4  ;;  %s336_s13 = sshll.u32 %s480_s2, 4  ;;  %s337_s13 = int_to_ptr.vmem [resolvable:$true] %s336_s13 }
   0x7   :  { %v63_v10 = vadd.s32 80, %v521_v4  ;;  %v64_v11 = vadd.s32 88, %v521_v4  ;;  %v61_v21 = vadd.s32 64, %v521_v4  ;;  %v62_v22 = vadd.s32 72, %v521_v4  ;;  %s432_s14 = scalar_lea.vmem %s337_s13, 256  ;;  %p437_p1 = scmp.lt.s32.totalorder %s337_s13, %s337_s13 }
   0x8   :  { %vm87_vm0 = vcmp.eq.s32.totalorder %v67_v6, %v526_v5  ;;  %vm88_vm1 = vcmp.eq.s32.totalorder %v68_v7, %v526_v5  ;;  %vm85_vm2 = vcmp.eq.s32.totalorder %v65_v8, %v526_v5  ;;  %vm86_vm3 = vcmp.eq.s32.totalorder %v66_v9, %v526_v5  ;;  %p433_p0 = scmp.ne.s32.totalorder %s337_s13, %s432_s14  ;;  %p438_p2 = scmp.lt.s32.totalorder %s432_s14, %s432_s14 }
   0x9   :  { %vm352_vm4 = vmpackc.low %vm88_vm1, %vm87_vm0  ;;  %vm83_vm6 = vcmp.eq.s32.totalorder %v63_v10, %v526_v5  ;;  %vm84_vm7 = vcmp.eq.s32.totalorder %v64_v11, %v526_v5  ;;  %vm81_vm9 = vcmp.eq.s32.totalorder %v61_v21, %v526_v5  ;;  %vm82_vm10 = vcmp.eq.s32.totalorder %v62_v22, %v526_v5 }
   0xa   :  { %387 = vmatpush3.bf16.msk.msra.mxu0 %vm352_vm4, %v477_v12  ;;  %vm354_vm5 = vmpackc.low %vm86_vm3, %vm85_vm2  ;;  %v59_v23 = vadd.s32 48, %v521_v4  ;;  %v60_v24 = vadd.s32 56, %v521_v4  ;;  %v57_v27 = vadd.s32 32, %v521_v4  ;;  %v58_v28 = vadd.s32 40, %v521_v4  ;;  %p439_p3 = por %p438_p2, %p437_p1 }
   0xb   :  { %388 = vmatprep.subr.bf16.mxu0 %v476_v3  ;;  %vm356_vm8 = vmpackc.low %vm84_vm7, %vm83_vm6  ;;  %v55_v30 = vadd.s32 16, %v521_v4  ;;  %v56_v31 = vadd.s32 24, %v521_v4  ;;  %v54_v33 = vadd.s32 8, %v521_v4  ;;  %v283_v40 = vmul.f32 %v281_v39, %v279_v36 }
   0xc   :  { %vm358_vm11 = vmpackc.low %vm82_vm10, %vm81_vm9  ;;  %vm79_vm12 = vcmp.eq.s32.totalorder %v59_v23, %v526_v5  ;;  %vm80_vm13 = vcmp.eq.s32.totalorder %v60_v24, %v526_v5  ;;  %vm77_vm15 = vcmp.eq.s32.totalorder %v57_v27, %v526_v5  ;;  %vm78_vm0 = vcmp.eq.s32.totalorder %v58_v28, %v526_v5  ;;  %p440_p4 = pnand %p439_p3, %p433_p0 }
   0xd   :  { %vm360_vm14 = vmpackc.low %vm80_vm13, %vm79_vm12  ;;  %vm75_vm2 = vcmp.eq.s32.totalorder %v55_v30, %v526_v5  ;;  %vm76_vm3 = vcmp.eq.s32.totalorder %v56_v31, %v526_v5  ;;  %vm74_vm6 = vcmp.eq.s32.totalorder %v54_v33, %v526_v5  ;;  %v280_v42 = vsub.f32 %v372_v41, %v368_v29 }
   0xe   :  { %389 = vmatpush3.bf16.msk.msra.mxu0 %vm354_vm5, %v477_v12  ;;  %vm362_vm1 = vmpackc.low %vm78_vm0, %vm77_vm15  ;;  %vm73_vm5 = vcmp.eq.s32.totalorder %v521_v4, %v526_v5  ;;  %v278_v43 = vsub.f32 %v370_v34, %v156_v37 }
   0xf   :  { %390 = vmatprep.subr.bf16.mxu0 %v476_v3  ;;  %vm364_vm4 = vmpackc.low %vm76_vm3, %vm75_vm2 }
  0x10   :  { %vm366_vm7 = vmpackc.low %vm74_vm6, %vm73_vm5  ;;  %v282_v44 = vmul.f32 %v280_v42, %v278_v43 }
  0x12   :  { %391 = vmatpush3.bf16.msk.msra.mxu0 %vm356_vm8, %v477_v12  ;;  %vm479_vm8 = vmmov 0  }
  0x13   :  { %392 = vmatprep.subr.bf16.mxu0 %v476_v3  ;;  %402 = vmatprep.mubr.msk.bf16.mxu0 %vm479_vm8, %v476_v3 }
  0x16   :  { %393 = vmatpush3.bf16.msk.msra.mxu0 %vm358_vm11, %v477_v12 }
  0x17   :  { %394 = vmatprep.subr.bf16.mxu0 %v476_v3 }
  0x1a   :  { %395 = vmatpush3.bf16.msk.msra.mxu0 %vm360_vm14, %v477_v12 }
  0x1b   :  { %396 = vmatprep.subr.bf16.mxu0 %v476_v3 }
  0x1c   :  { %176 = vperm.xlu0 %414, %v156_v37  }
  0x1e   :  { %397 = vmatpush3.bf16.msk.msra.mxu0 %vm362_vm1, %v477_v12 }
  0x1f   :  { %398 = vmatprep.subr.bf16.mxu0 %v476_v3 }
  0x20   :  { %294 = vperm.xlu0 %414, %v283_v40  }
  0x22   :  { %399 = vmatpush3.bf16.msk.msra.mxu0 %vm364_vm4, %v477_v12 }
  0x23   :  { %400 = vmatprep.subr.bf16.mxu0 %v476_v3 }
  0x26   :  { %401 = vmatpush3.bf16.msk.msra.mxu0 %vm366_vm7, %v477_v12 }
  0x8b   :  { %v546_v13 = vpop.xlane.xlu0 %24 }
  0x8c   :  { %v28_v14 = vsub.f32 %v22_v0, %v546_v13 }
  0x8e   :  { %v30_v15 = vmul.f32 1.442695, %v28_v14 }
  0x8f   :  { %v549_v16 = vpop.xlane.xlu0 %26 }
  0x90   :  { %416 = vpow2.f32 %v30_v15  ;;  %v29_v17 = vsub.f32 %v23_v1, %v549_v16 }
  0x92   :  { %v32_v18 = vmul.f32 1.442695, %v29_v17 }
  0x94   :  { %418 = vpow2.f32 %v32_v18 }
  0x9d   :  { %v552_v19 = vpop.eup %416 }
  0x9e   :  { %34 = vadd.xlane.f32.xlu1 %v552_v19 }
  0xa1   :  { %v555_v20 = vpop.eup %418 }
  0xa2   :  { %36 = vadd.xlane.f32.xlu1 %v555_v20 }
  0xb3   :  { %181 = vperm.xlu1 %415, %v157_v26  }
  0xb7   :  { %196 = vperm.xlu1 %415, %v368_v29  }
  0xbb   :  { %201 = vperm.xlu1 %415, %v369_v32  }
  0xbf   :  { %218 = vperm.xlu1 %415, %v370_v34  }
  0xc3   :  { %223 = vperm.xlu1 %415, %v371_v35  }
  0xc7   :  { %240 = vperm.xlu1 %415, %v372_v41  }
  0xcb   :  { %245 = vperm.xlu1 %415, %v373_v38  }
  0xcf   :  { %289 = vperm.xlu1 %415, %v282_v44  }
 0x127   :  { %v35_v45 = vpop.xlane.xlu1 %34 }
 0x128   :  { %420 = vlog2.f32 %v35_v45 }
 0x129   :  { %422 = vrcp.f32 %v35_v45 }
 0x12b   :  { %v37_v46 = vpop.xlane.xlu1 %36 }
 0x12c   :  { %424 = vlog2.f32 %v37_v46 }
 0x12d   :  { %426 = vrcp.f32 %v37_v46 }
 0x135   :  { %v421_v47 = vpop.eup %420 }
 0x136   :  { %v39_v48 = vmul.f32 0.6931472, %v421_v47  ;;  %v423_v49 = vpop.eup %422 }
 0x137   :  { %v48_v54 = vmul.f32 %v423_v49, %v552_v19 }
 0x138   :  { %v42_v50 = vadd.f32 %v39_v48, %v546_v13 }
 0x139   :  { %v425_v51 = vpop.eup %424 }
 0x13a   :  { %v427_v52 = vpop.eup %426  ;;  %44 = vst [vmem:[#allocation4] sm:$0xff] %v42_v50  ;;  %v41_v53 = vmul.f32 0.6931472, %v425_v51 }
 0x13b   :  { %v49_v55 = vmul.f32 %v427_v52, %v555_v20 }
 0x13c   :  { %v43_v56 = vadd.f32 %v41_v53, %v549_v16 }
 0x13d   :  { %v50_v57 = vpack.c.bf16 %v49_v55, %v48_v54 }
 0x13e   :  { %45 = vst [vmem:[#allocation4 + $0x8] sm:$0xff] %v43_v56 }
 0x13f   :  { %403 = vmatmul.mubr.bf16.vlgmr.msra.gmra.mxu0 %v50_v57 }
 0x140   :  { %443 = shalt.err (!%p440_p4)
}
 0x141   :  { %s481_s15 = smov 128   ;;  %s482_s16 = smov 8   ;;  %v182_v58 = vpop.permute.xlu1 %181  ;;  %v167_v63 = vld [vmem:[%s644_s3] sm:$0x1]  ;;  %v187_v0 = vsub.s32 0, %v521_v4  ;;  %v177_v10 = vpop.permute.xlu0 %176 }
 0x142   :  { %342 = dma.vmem_to_hbm [thread:$0]  %s337_s13, 256, %s646_s5, [#allocation5], %s481_s15, %s481_s15, %s482_s16  }
 0x143   :  { %v374_v1 = vld [vmem:[%s644_s3 + $0x1] sm:$0x1]  ;;  %v375_v2 = vld [vmem:[%s644_s3 + $0x2] sm:$0x1]  ;;  %v376_v3 = vld [vmem:[%s644_s3 + $0x3] sm:$0x1]  ;;  %v188_v6 = vrot.slane %v167_v63, %v187_v0 }
 0x144   :  { %v208_v7 = vrot.slane %v374_v1, %v187_v0  ;;  %v230_v8 = vrot.slane %v375_v2, %v187_v0  ;;  %v252_v9 = vrot.slane %v376_v3, %v187_v0  ;;  %v284_v11 = vsub.f32 %v375_v2, %v167_v63  ;;  %s483_s3 = smov [#allocation2]  }
 0x145   :  { %v197_v59 = vpop.permute.xlu1 %196  ;;  %v285_v4 = vsub.f32 %v376_v3, %v374_v1  ;;  %v262_v15 = vmax.f32 %v177_v10, %v188_v6  ;;  %v263_v17 = vmax.f32 %v182_v58, %v188_v6  ;;  %v295_v34 = vpop.permute.xlu0 %294  ;;  %v190_v41 = vsub.f32 %v177_v10, %v188_v6  ;;  %s324_s24 = sshll.u32 %s483_s3, 4  ;;  %s325_s24 = int_to_ptr.vmem [resolvable:$true] %s324_s24 }
 0x146   :  { %v270_v12 = vmax.f32 %v197_v59, %v208_v7  ;;  %v210_v40 = vsub.f32 %v197_v59, %v208_v7  ;;  %v191_v43 = vsub.f32 %v182_v58, %v188_v6  ;;  %s452_s25 = scalar_lea.vmem %s325_s24, 256  ;;  %p457_p6 = scmp.lt.s32.totalorder %s325_s24, %s325_s24 }
 0x147   :  { %v286_v19 = vmul.f32 %v285_v4, %v284_v11  ;;  %v192_v47 = vand.u32 2147483647, %v190_v41  ;;  %p453_p5 = scmp.ne.s32.totalorder %s325_s24, %s452_s25  ;;  %p458_p7 = scmp.lt.s32.totalorder %s452_s25, %s452_s25 }
 0x148   :  { %v212_v45 = vand.u32 2147483647, %v210_v40  ;;  %v193_v48 = vand.u32 2147483647, %v191_v43 }
 0x149   :  { %v202_v60 = vpop.permute.xlu1 %201  ;;  %v301_v24 = vrot.slane %v286_v19, %v187_v0  ;;  %p459_p8 = por %p458_p7, %p457_p6 }
 0x14a   :  { %v271_v18 = vmax.f32 %v202_v60, %v208_v7  ;;  %v211_v44 = vsub.f32 %v202_v60, %v208_v7  ;;  %v214_v53 = vadd.f32 %v212_v45, %v192_v47 }
 0x14b   :  { %v304_v37 = vadd.f32 %v301_v24, %v295_v34  ;;  %p460_p9 = pnand %p459_p8, %p453_p5 }
 0x14c   :  { %v213_v49 = vand.u32 2147483647, %v211_v44 }
 0x14d   :  { %v219_v61 = vpop.permute.xlu1 %218 }
 0x14e   :  { %v260_v13 = vmin.f32 %v219_v61, %v230_v8  ;;  %v232_v46 = vsub.f32 %v219_v61, %v230_v8  ;;  %v215_v54 = vadd.f32 %v213_v49, %v193_v48 }
 0x150   :  { %v264_v23 = vsub.f32 %v260_v13, %v262_v15  ;;  %v234_v50 = vand.u32 2147483647, %v232_v46 }
 0x151   :  { %v224_v62 = vpop.permute.xlu1 %223 }
 0x152   :  { %v261_v20 = vmin.f32 %v224_v62, %v230_v8  ;;  %v266_v28 = vmax.f32 %v264_v23, 0.0  ;;  %v233_v51 = vsub.f32 %v224_v62, %v230_v8  ;;  %v236_v59 = vadd.f32 %v234_v50, %v214_v53 }
 0x154   :  { %v265_v25 = vsub.f32 %v261_v20, %v263_v17  ;;  %v235_v55 = vand.u32 2147483647, %v233_v51 }
 0x155   :  { %v241_v5 = vpop.permute.xlu1 %240 }
 0x156   :  { %v268_v14 = vmin.f32 %v241_v5, %v252_v9  ;;  %v267_v30 = vmax.f32 %v265_v25, 0.0  ;;  %v254_v52 = vsub.f32 %v241_v5, %v252_v9  ;;  %v237_v1 = vadd.f32 %v235_v55, %v215_v54 }
 0x158   :  { %v272_v21 = vsub.f32 %v268_v14, %v270_v12  ;;  %v256_v56 = vand.u32 2147483647, %v254_v52 }
 0x159   :  { %v246_v16 = vpop.permute.xlu1 %245 }
 0x15a   :  { %v269_v22 = vmin.f32 %v246_v16, %v252_v9  ;;  %v274_v26 = vmax.f32 %v272_v21, 0.0  ;;  %v255_v57 = vsub.f32 %v246_v16, %v252_v9  ;;  %v258_v2 = vadd.f32 %v256_v56, %v236_v59 }
 0x15c   :  { %v273_v27 = vsub.f32 %v269_v22, %v271_v18  ;;  %v276_v32 = vmul.f32 %v274_v26, %v266_v28  ;;  %v257_v58 = vand.u32 2147483647, %v255_v57 }
 0x15d   :  { %v290_v29 = vpop.permute.xlu1 %289 }
 0x15e   :  { %v275_v31 = vmax.f32 %v273_v27, 0.0  ;;  %v303_v33 = vadd.f32 %v301_v24, %v290_v29  ;;  %v259_v11 = vadd.f32 %v257_v58, %v237_v1 }
 0x160   :  { %v305_v35 = vsub.f32 %v303_v33, %v276_v32  ;;  %v277_v36 = vmul.f32 %v275_v31, %v267_v30 }
 0x162   :  { %v307_v38 = vadd.f32 1e-07, %v305_v35  ;;  %v306_v39 = vsub.f32 %v304_v37, %v277_v36 }
 0x164   :  { %428 = vrcp.f32 %v307_v38  ;;  %v308_v42 = vadd.f32 1e-07, %v306_v39 }
 0x166   :  { %430 = vrcp.f32 %v308_v42 }
 0x171   :  { %v429_v63 = vpop.eup %428 }
 0x172   :  { %v311_v3 = vmul.f32 %v429_v63, %v276_v32 }
 0x173   :  { %v431_v7 = vpop.eup %430 }
 0x174   :  { %v312_v9 = vmul.f32 %v431_v7, %v277_v36 }
 0x1ff   :  { %v147_v0 = vpop.f32.mrf.mxu0 }
 0x200   :  { %v154_v60 = vsub.f32 0.0, %v147_v0 }
 0x201   :  { %v404_v61 = vpop.f32.mrf.mxu0 }
 0x202   :  { %v313_v6 = vadd.f32 %v258_v2, %v154_v60 }
 0x203   :  { %v150_v10 = vpop.f32.mrf.mxu0 }
 0x204   :  { %v315_v62 = vsub.f32 %v313_v6, %v311_v3  ;;  %v155_v5 = vsub.f32 0.0, %v150_v10 }
 0x205   :  { %v405_v8 = vpop.f32.mrf.mxu0 }
 0x206   :  { %317 = vst [vmem:[#allocation2] sm:$0xff] %v315_v62  ;;  %v314_v4 = vadd.f32 %v259_v11, %v155_v5 }
 0x208   :  { %v316_v12 = vsub.f32 %v314_v4, %v312_v9 }
 0x20a   :  { %318 = vst [vmem:[#allocation2 + $0x8] sm:$0xff] %v316_v12 }
 0x20b   :  { %463 = shalt.err (!%p460_p9)
}
 0x20c   :  { %330 = dma.vmem_to_hbm [thread:$0]  %s325_s24, 256, %s645_s4, [#allocation3], %s481_s15, %s481_s15, %s482_s16  }
 0x20d   :  { %472 = dma.done.wait [#allocation3], 256  }
 0x20e   :  { %473 = vsyncadd [#allocation3], 4294967040 }
 0x20f   :  { %474 = dma.done.wait [#allocation5], 256  }
 0x210   :  { %475 = vsyncadd [#allocation5], 4294967040 }
 0x211   :  { %349 = vsyncpa [#allocation3], 1 }
 0x212   :  { %350 = vsyncpa [#allocation5], 1 }

</bundles_post_ra>
